<compile_context>
chip_gen: v7x
topology: tpu7x:2x2x1
jax: 0.10.0
libtpu: 0.0.40
codegen_flags: <defaults>
</compile_context>

<pallas_src>
import functools

import jax
import jax.numpy as jnp
from jax.experimental import pallas as pl
from jax.experimental.pallas import tpu as pltpu


def _backproject_kernel(kinv_ref, depth_ref, out_ref, *, rows_block):
    b = pl.program_id(0)
    r = pl.program_id(1)

    d = depth_ref[0, 0]                                   # (RB, W) f32, sublane-dense tile
    rb, w = d.shape

    # Pixel coordinates of this row tile: x = column index, y = global row index.
    # Identical to torch.meshgrid(arange(W), arange(H), indexing='xy') + row-major flatten.
    x = jax.lax.broadcasted_iota(jnp.int32, (rb, w), 1).astype(jnp.float32)
    y = (jax.lax.broadcasted_iota(jnp.int32, (rb, w), 0)
         + r * rows_block).astype(jnp.float32)

    # Per-batch inverse intrinsics (row-major 3x3) from SMEM — scalar loads, no per-tile DMA.
    base = b * 9
    k00 = kinv_ref[base + 0]; k01 = kinv_ref[base + 1]; k02 = kinv_ref[base + 2]
    k10 = kinv_ref[base + 3]; k11 = kinv_ref[base + 4]; k12 = kinv_ref[base + 5]
    k20 = kinv_ref[base + 6]; k21 = kinv_ref[base + 7]; k22 = kinv_ref[base + 8]

    # Direct per-row stores — no cross-sublane concat, each one a dense unmasked store.
    out_ref[0, 0] = (k00 * x + k01 * y + k02) * d
    out_ref[0, 1] = (k10 * x + k11 * y + k12) * d
    out_ref[0, 2] = (k20 * x + k21 * y + k22) * d
    out_ref[0, 3] = jnp.ones_like(d)                      # homogeneous row


def _pick_rows_block(H, W, B, target_elems=256 * 1024):
    """Rows per block: a multiple of 8 that divides H (or H itself), sized ~target.

    Keeps the double-buffered block footprint (~20 bytes/elem) well under the
    16 MiB v5e scoped-VMEM default, and keeps >=2 row tiles when B == 1 so the
    parallel grid still shards across v7x's two TensorCores.
    """
    if H % 8 != 0:
        return H                      # last-two block dims must then equal full dims
    divisors = [d for d in range(8, H + 1, 8) if H % d == 0]
    max_rb = H if B > 1 else max(H // 2, 8)
    cands = [d for d in divisors if d <= max_rb] or divisors
    fitting = [d for d in cands if d * W <= target_elems]
    return max(fitting) if fitting else min(cands)


def backproject_depth(depth, K_inv):
    """depth: (B, 1, H, W); K_inv: (B, 4, 4). Returns (B, 4, H*W) float32."""
    B, _, H, W = depth.shape
    depth_f32 = depth.astype(jnp.float32)
    kinv_flat = K_inv[:, :3, :3].astype(jnp.float32).reshape(B * 9)   # 1D SMEM (no 2D padding)

    rb = _pick_rows_block(H, W, B)
    grid = (B, H // rb)               # rb always divides H (or equals H) — no padding/slicing

    out = pl.pallas_call(
        functools.partial(_backproject_kernel, rows_block=rb),
        out_shape=jax.ShapeDtypeStruct((B, 4, H, W), jnp.float32),
        grid_spec=pltpu.PrefetchScalarGridSpec(
            num_scalar_prefetch=0,
            grid=grid,
            in_specs=[
                # Whole (B*9,) K_inv table resident in SMEM for the entire grid.
                pl.BlockSpec(memory_space=pltpu.MemorySpace.SMEM),
                # Depth tile: (1, 1, RB, W) — RB multiple of 8 (or = H), W = full dim.
                pl.BlockSpec((1, 1, rb, W), lambda b, r: (b, 0, r, 0)),
            ],
            out_specs=pl.BlockSpec((1, 4, rb, W), lambda b, r: (b, 0, r, 0)),
        ),
        compiler_params=pltpu.CompilerParams(
            dimension_semantics=("parallel", "parallel")),
    )(kinv_flat, depth_f32)
    return out.reshape(B, 4, H * W)   # metadata-only flatten of the trailing dims


# ----------------------------------------------------------------------------
# Pure-JAX reference (mirrors the PyTorch module exactly) for a correctness check.
# ----------------------------------------------------------------------------
def backproject_depth_ref(depth, K_inv):
    B, _, H, W = depth.shape
    xs = jnp.arange(W, dtype=jnp.float32)
    ys = jnp.arange(H, dtype=jnp.float32)
    X, Y = jnp.meshgrid(xs, ys, indexing="xy")                    # (H, W) each
    pix = jnp.stack(
        [X.reshape(-1), Y.reshape(-1), jnp.ones(H * W, jnp.float32)], axis=0)  # (3, HW)
    pts = jnp.einsum("bij,jp->bip", K_inv[:, :3, :3].astype(jnp.float32), pix)
    pts = pts * depth.reshape(B, 1, H * W).astype(jnp.float32)
    ones = jnp.ones((B, 1, H * W), jnp.float32)
    return jnp.concatenate([pts, ones], axis=1)


def _make_inputs(key, B, H, W):
    kd, kk = jax.random.split(key)
    depth = jax.random.uniform(kd, (B, 1, H, W), jnp.float32, minval=0.1, maxval=10.0)
    fx, fy, cx, cy = 0.58 * W, 1.92 * H, 0.5 * W, 0.5 * H
    kinv33 = jnp.array([[1.0 / fx, 0.0, -cx / fx],
                        [0.0, 1.0 / fy, -cy / fy],
                        [0.0, 0.0, 1.0]], jnp.float32)
    K_inv = jnp.tile(jnp.eye(4, dtype=jnp.float32)[None], (B, 1, 1))
    K_inv = K_inv.at[:, :3, :3].set(kinv33)
    K_inv = K_inv + 0.01 * jax.random.normal(kk, (B, 4, 4), jnp.float32)
    return depth, K_inv


# ----------------------------------------------------------------------------
# Main
# ----------------------------------------------------------------------------
if __name__ == "__main__":
    fn = jax.jit(backproject_depth)
    key = jax.random.PRNGKey(0)

    # (B, H, W): primary small case + multi-row-tile case + H not a multiple of 8.
    cases = [(2, 16, 16), (1, 24, 40), (1, 10, 12)]
    for i, (B, H, W) in enumerate(cases):
        key, sub = jax.random.split(key)
        depth, K_inv = _make_inputs(sub, B, H, W)
        pts = fn(depth, K_inv)
        jax.block_until_ready(pts)
        assert pts.shape == (B, 4, H * W), pts.shape
        ref = backproject_depth_ref(depth, K_inv)
        max_err = float(jnp.max(jnp.abs(pts - ref)))
        assert max_err < 1e-4, f"case {i} (B={B},H={H},W={W}) max abs err {max_err}"

    print("KERNEL_OK")
</pallas_src>

<mosaic_0001>
module attributes {stable_mosaic.version = 11 : i64} {
  func.func @_backproject_kernel(%arg0: i32, %arg1: i32, %arg2: memref<18xf32, #tpu.memory_space<smem>>, %arg3: memref<1x1x16x16xf32, #tpu.memory_space<vmem>>, %arg4: memref<1x4x16x16xf32, #tpu.memory_space<vmem>>) attributes {dimension_semantics = [#tpu.dimension_semantics<parallel>, #tpu.dimension_semantics<parallel>], iteration_bounds = array<i64: 2, 1>, scalar_prefetch = 0 : i64, scratch_operands = 0 : i64, tpu.core_type = #tpu.core_type<tc>, window_params = [{transform_indices = @transform_0, window_bounds = array<i64: 18>}, {transform_indices = @transform_1, window_bounds = array<i64: 1, 1, 16, 16>}, {transform_indices = @transform_2, window_bounds = array<i64: 1, 4, 16, 16>}]} {
    %c0 = arith.constant 0 : index
    %c0_0 = arith.constant 0 : index
    %c0_1 = arith.constant 0 : index
    %c0_2 = arith.constant 0 : index
    %0 = vector.load %arg3[%c0, %c0_0, %c0_1, %c0_2] : memref<1x1x16x16xf32, #tpu.memory_space<vmem>>, vector<1x1x16x16xf32>
    %1 = vector.shape_cast %0 : vector<1x1x16x16xf32> to vector<16x16xf32>
    %2 = tpu.iota {dimensions = array<i32: 1>} : vector<16x16xi32>
    %3 = arith.sitofp %2 : vector<16x16xi32> to vector<16x16xf32>
    %4 = tpu.iota {dimensions = array<i32: 0>} : vector<16x16xi32>
    %c16_i32 = arith.constant 16 : i32
    %5 = arith.muli %arg1, %c16_i32 : i32
    %6 = vector.broadcast %5 : i32 to vector<16x16xi32>
    %7 = arith.addi %4, %6 : vector<16x16xi32>
    %8 = arith.sitofp %7 : vector<16x16xi32> to vector<16x16xf32>
    %c9_i32 = arith.constant 9 : i32
    %9 = arith.muli %arg0, %c9_i32 : i32
    %c0_i32 = arith.constant 0 : i32
    %10 = arith.addi %9, %c0_i32 : i32
    %11 = arith.index_cast %10 : i32 to index
    %12 = memref.load %arg2[%11] : memref<18xf32, #tpu.memory_space<smem>>
    %c1_i32 = arith.constant 1 : i32
    %13 = arith.addi %9, %c1_i32 : i32
    %14 = arith.index_cast %13 : i32 to index
    %15 = memref.load %arg2[%14] : memref<18xf32, #tpu.memory_space<smem>>
    %c2_i32 = arith.constant 2 : i32
    %16 = arith.addi %9, %c2_i32 : i32
    %17 = arith.index_cast %16 : i32 to index
    %18 = memref.load %arg2[%17] : memref<18xf32, #tpu.memory_space<smem>>
    %c3_i32 = arith.constant 3 : i32
    %19 = arith.addi %9, %c3_i32 : i32
    %20 = arith.index_cast %19 : i32 to index
    %21 = memref.load %arg2[%20] : memref<18xf32, #tpu.memory_space<smem>>
    %c4_i32 = arith.constant 4 : i32
    %22 = arith.addi %9, %c4_i32 : i32
    %23 = arith.index_cast %22 : i32 to index
    %24 = memref.load %arg2[%23] : memref<18xf32, #tpu.memory_space<smem>>
    %c5_i32 = arith.constant 5 : i32
    %25 = arith.addi %9, %c5_i32 : i32
    %26 = arith.index_cast %25 : i32 to index
    %27 = memref.load %arg2[%26] : memref<18xf32, #tpu.memory_space<smem>>
    %c6_i32 = arith.constant 6 : i32
    %28 = arith.addi %9, %c6_i32 : i32
    %29 = arith.index_cast %28 : i32 to index
    %30 = memref.load %arg2[%29] : memref<18xf32, #tpu.memory_space<smem>>
    %c7_i32 = arith.constant 7 : i32
    %31 = arith.addi %9, %c7_i32 : i32
    %32 = arith.index_cast %31 : i32 to index
    %33 = memref.load %arg2[%32] : memref<18xf32, #tpu.memory_space<smem>>
    %c8_i32 = arith.constant 8 : i32
    %34 = arith.addi %9, %c8_i32 : i32
    %35 = arith.index_cast %34 : i32 to index
    %36 = memref.load %arg2[%35] : memref<18xf32, #tpu.memory_space<smem>>
    %37 = vector.broadcast %12 : f32 to vector<16x16xf32>
    %38 = arith.mulf %37, %3 : vector<16x16xf32>
    %39 = vector.broadcast %15 : f32 to vector<16x16xf32>
    %40 = arith.mulf %39, %8 : vector<16x16xf32>
    %41 = arith.addf %38, %40 : vector<16x16xf32>
    %42 = vector.broadcast %18 : f32 to vector<16x16xf32>
    %43 = arith.addf %41, %42 : vector<16x16xf32>
    %44 = arith.mulf %43, %1 : vector<16x16xf32>
    %c0_3 = arith.constant 0 : index
    %c0_4 = arith.constant 0 : index
    %c0_5 = arith.constant 0 : index
    %c0_6 = arith.constant 0 : index
    %45 = vector.load %arg4[%c0_3, %c0_4, %c0_5, %c0_6] : memref<1x4x16x16xf32, #tpu.memory_space<vmem>>, vector<1x1x16x16xf32>
    %46 = vector.shape_cast %45 : vector<1x1x16x16xf32> to vector<16x16xf32>
    %47 = vector.shape_cast %44 : vector<16x16xf32> to vector<1x1x16x16xf32>
    tpu.vector_store %arg4[%c0_3, %c0_4, %c0_5, %c0_6], %47 {strides = array<i32>} : memref<1x4x16x16xf32, #tpu.memory_space<vmem>>, vector<1x1x16x16xf32>,
    %48 = vector.broadcast %21 : f32 to vector<16x16xf32>
    %49 = arith.mulf %48, %3 : vector<16x16xf32>
    %50 = vector.broadcast %24 : f32 to vector<16x16xf32>
    %51 = arith.mulf %50, %8 : vector<16x16xf32>
    %52 = arith.addf %49, %51 : vector<16x16xf32>
    %53 = vector.broadcast %27 : f32 to vector<16x16xf32>
    %54 = arith.addf %52, %53 : vector<16x16xf32>
    %55 = arith.mulf %54, %1 : vector<16x16xf32>
    %c0_7 = arith.constant 0 : index
    %c1 = arith.constant 1 : index
    %c0_8 = arith.constant 0 : index
    %c0_9 = arith.constant 0 : index
    %56 = vector.load %arg4[%c0_7, %c1, %c0_8, %c0_9] : memref<1x4x16x16xf32, #tpu.memory_space<vmem>>, vector<1x1x16x16xf32>
    %57 = vector.shape_cast %56 : vector<1x1x16x16xf32> to vector<16x16xf32>
    %58 = vector.shape_cast %55 : vector<16x16xf32> to vector<1x1x16x16xf32>
    tpu.vector_store %arg4[%c0_7, %c1, %c0_8, %c0_9], %58 {strides = array<i32>} : memref<1x4x16x16xf32, #tpu.memory_space<vmem>>, vector<1x1x16x16xf32>,
    %59 = vector.broadcast %30 : f32 to vector<16x16xf32>
    %60 = arith.mulf %59, %3 : vector<16x16xf32>
    %61 = vector.broadcast %33 : f32 to vector<16x16xf32>
    %62 = arith.mulf %61, %8 : vector<16x16xf32>
    %63 = arith.addf %60, %62 : vector<16x16xf32>
    %64 = vector.broadcast %36 : f32 to vector<16x16xf32>
    %65 = arith.addf %63, %64 : vector<16x16xf32>
    %66 = arith.mulf %65, %1 : vector<16x16xf32>
    %c0_10 = arith.constant 0 : index
    %c2 = arith.constant 2 : index
    %c0_11 = arith.constant 0 : index
    %c0_12 = arith.constant 0 : index
    %67 = vector.load %arg4[%c0_10, %c2, %c0_11, %c0_12] : memref<1x4x16x16xf32, #tpu.memory_space<vmem>>, vector<1x1x16x16xf32>
    %68 = vector.shape_cast %67 : vector<1x1x16x16xf32> to vector<16x16xf32>
    %69 = vector.shape_cast %66 : vector<16x16xf32> to vector<1x1x16x16xf32>
    tpu.vector_store %arg4[%c0_10, %c2, %c0_11, %c0_12], %69 {strides = array<i32>} : memref<1x4x16x16xf32, #tpu.memory_space<vmem>>, vector<1x1x16x16xf32>,
    %cst = arith.constant 1.000000e+00 : f32
    %70 = vector.broadcast %cst : f32 to vector<16x16xf32>
    %c0_13 = arith.constant 0 : index
    %c3 = arith.constant 3 : index
    %c0_14 = arith.constant 0 : index
    %c0_15 = arith.constant 0 : index
    %71 = vector.load %arg4[%c0_13, %c3, %c0_14, %c0_15] : memref<1x4x16x16xf32, #tpu.memory_space<vmem>>, vector<1x1x16x16xf32>
    %72 = vector.shape_cast %71 : vector<1x1x16x16xf32> to vector<16x16xf32>
    %73 = vector.shape_cast %70 : vector<16x16xf32> to vector<1x1x16x16xf32>
    tpu.vector_store %arg4[%c0_13, %c3, %c0_14, %c0_15], %73 {strides = array<i32>} : memref<1x4x16x16xf32, #tpu.memory_space<vmem>>, vector<1x1x16x16xf32>,
    return
  }
  func.func @transform_0(%arg0: i32, %arg1: i32) -> i32 {
    %c0_i32 = arith.constant 0 : i32
    %c0_i32_0 = arith.constant 0 : i32
    return %c0_i32 : i32
  }
  func.func @transform_1(%arg0: i32, %arg1: i32) -> (i32, i32, i32, i32) {
    %c0_i32 = arith.constant 0 : i32
    %c0_i32_0 = arith.constant 0 : i32
    %c0_i32_1 = arith.constant 0 : i32
    return %arg0, %c0_i32, %arg1, %c0_i32_0 : i32, i32, i32, i32
  }
  func.func @transform_2(%arg0: i32, %arg1: i32) -> (i32, i32, i32, i32) {
    %c0_i32 = arith.constant 0 : i32
    %c0_i32_0 = arith.constant 0 : i32
    %c0_i32_1 = arith.constant 0 : i32
    return %arg0, %c0_i32, %arg1, %c0_i32_0 : i32, i32, i32, i32
  }
}

</mosaic_0001>

<bundles_post_ra>
// kernel: backproject_depth.1
= control target key start
LH: loop header
LB: loop body
LE: loop exit
PB: predicated region body
PF: predicated region fallthrough
CT: control target
= control target key end

     0   :  { %7 = vsyncpa [#allocation4], 0  ;;  %s801_s0 = inlined_call_operand.vmem [shape: f32[18], index: 0, kind: input, shape index: {}]   ;;  %s802_s1 = inlined_call_operand.hbm [shape: f32[2,1,16,16], index: 1, kind: input, shape index: {}]   ;;  %s803_s2 = inlined_call_operand.vmem [shape: f32[2,4,16,16], index: 2, kind: output, shape index: {}]  }
   0x1   :  { %8 = vsyncpa [#allocation3], 0 }
   0x2   :  { %10 = vsyncpa [#allocation3 + $0x1], 0  ;;  %s606_s9 = smov 0   ;;  %s608_s10 = smov 0  }
   0x3   :  { %s610_s11 = smov 0   ;;  %s612_s12 = smov 0  }
   0x4   :  { %s614_s13 = smov 0   ;;  %s616_s14 = smov 0  }
   0x5 LB: > { %s393_s15 = sadd.s32 4294967295, %s584_s14   ;;  %s58_s16 = sadd.s32 1, %s572_s11  ;;  %s584_s14 = sphi %s616_s14, %s16_s14   ;;  %s580_s13 = sphi %s614_s13, %s820_s13   ;;  %s576_s12 = sphi %s612_s12, %s819_s12   ;;  %s572_s11 = sphi %s610_s11, %s818_s11   ;;  %s568_s10 = sphi %s608_s10, %s817_s10   ;;  %s564_s9 = sphi %s606_s9, %s816_s9  }
   0x6   : > { %p65_p0 = scmp.ne.s32.totalorder %s572_s11, %s568_s10  ;;  %p66_p1 = scmp.eq.s32.totalorder %s584_s14, 0 }
   0x7   : > { %p71_p2 = scmp.ne.s32.totalorder %s568_s10, %s564_s9  ;;  %p640_p3 = scmp.eq.s32.totalorder %s393_s15, 0 }
   0x8   : > { %p67_p4 = por %p66_p1, %p65_p0  ;;  %p395_p5 = scmp.ge.s32.totalorder %s584_s14, 1 }
   0x9   : > { %s808_s17 = scalar_select %p640_p3, 1, 0 }
   0xa   : > { %p647_p6 = por %p640_p3, %p71_p2  ;;  %p110_p7 = scmp.lt.s32.totalorder %s584_s14, 3 }
   0xb   : > { %s123_s21 = sshll.u32 %s801_s0, 4  ;;  %p431_p10 = scmp.lt.s32.totalorder %s584_s14, 2  ;;  %s124_s21 = int_to_ptr.vmem [resolvable:$true] %s123_s21 }
   0xc   : > { %s809_s18 = scalar_select %p647_p6, 1, 0 }
   0xd   : > { %p655_p8 = pnand %p395_p5, %p110_p7  ;;  %s134_s23 = sand.u32 1, %s572_s11  }
   0xe   : > { %p665_p12 = pnand %p431_p10, %p67_p4  ;;  %s485_s25 = scalar_lea.vmem %s124_s21, 16 }
   0xf   : > { %s810_s22 = scalar_select %p655_p8, 1, 0 }
  0x10   : > { %p422_p9 = pneg %p655_p8  ;;  %p486_p13 = scmp.ne.s32.totalorder %s124_s21, %s485_s25 }
  0x11   : > { %p493_p5 = scmp.lt.s32.totalorder %s124_s21, %s124_s21  ;;  %p494_p7 = scmp.lt.s32.totalorder %s485_s25, %s485_s25 }
  0x12   : > { %p423_p11 = pnand %p422_p9, %p640_p3 }
  0x13   : > { %p495_p6 = por %p494_p7, %p493_p5 }
  0x14   : > { %p487_p0 = pneg %p423_p11 }
  0x16   : > { %p488_p1 = pnand %p487_p0, %p486_p13 }
  0x18   : > { %p489_p2 = pneg %p488_p1 }
  0x1a   : > { %p496_p8 = pnand %p495_p6, %p489_p2 }
  0x1c   : > { %499 = shalt.err (!%p496_p8)
}
  0x1d   : > { %s586_s26 = smov [#allocation2]   ;;  %s28_s27 = sadd.s32 1, %s580_s13 }
  0x1e   : > { %425 = dma.vmem_to_smem (!%p423_p11), %s124_s21, 16, %s586_s26, [#allocation4]  }
  0x1f   : > { %s398_s28 = sshll.u32 %s134_s23, 4  ;;  %p30_p4 = scmp.ge.s32.totalorder %s28_s27, 2 }
  0x20   : > { %s414_s29 = sshll.u32 %s580_s13, 8  ;;  %s138_s30 = scalar_lea.vmem [#allocation5], %s398_s28 }
  0x21   : > { %s147_s3 = sshll.u32 %s138_s30, 4  ;;  %s822_s27 = smov (%p30_p4, %s28_s27), 0  ;;  %s678_s3 = int_to_ptr.vmem [resolvable:$true] %s147_s3 }
  0x22   : > { %s676_s6 = scalar_lea.hbm %s802_s1, %s414_s29  ;;  %s53_s7 = ssub.s32 %s580_s13, %s822_s27 }
  0x23   : > { %p682_p6 = scmp.eq.s32.totalorder %s53_s7, 0  ;;  %s686_s9 = scalar_lea.sflag [#allocation3], %s134_s23 }
  0x24   : > { %s500_s15 = scalar_lea.hbm %s676_s6, 256  ;;  %p502_p9 = pneg %p665_p12 }
  0x25   : > { %p501_p8 = scmp.ne.s32.totalorder %s676_s6, %s500_s15  ;;  %s505_s21 = scalar_lea.hbm %s802_s1, 512 }
  0x26   : > { %p506_p13 = scmp.lt.u32.totalorder %s676_s6, %s802_s1  ;;  %p507_p0 = scmp.lt.u32.totalorder %s505_s21, %s500_s15 }
  0x27   : > { %p503_p10 = pnand %p502_p9, %p501_p8  ;;  %p509_p2 = scmp.lt.u32.totalorder %s500_s15, %s676_s6 }
  0x28   : > { %p508_p1 = por %p507_p0, %p506_p13 }
  0x29   : > { %p504_p11 = pneg %p503_p10 }
  0x2a   : > { %p510_p5 = por %p509_p2, %p508_p1 }
  0x2c   : > { %p511_p7 = pnand %p510_p5, %p504_p11 }
  0x2e   : > { %514 = shalt.err (!%p511_p7)
}
  0x2f   : > { %s515_s23 = scalar_lea.vmem %s678_s3, 256  ;;  %s587_s28 = smov [#allocation5]  }
  0x30   : > { %p516_p4 = scmp.ne.s32.totalorder %s678_s3, %s515_s23  ;;  %s520_s29 = sshll.u32 %s587_s28, 4  ;;  %s521_s29 = int_to_ptr.vmem [resolvable:$false] %s520_s29 }
  0x31   : > { %s522_s30 = scalar_lea.vmem %s521_s29, 512  ;;  %p523_p3 = scmp.lt.s32.totalorder %s678_s3, %s521_s29 }
  0x32   : > { %p518_p8 = pnand %p516_p4, %p502_p9  ;;  %p524_p13 = scmp.lt.s32.totalorder %s522_s30, %s515_s23 }
  0x34   : > { %p519_p10 = pneg %p518_p8  ;;  %p525_p0 = por %p524_p13, %p523_p3 }
  0x36   : > { %p526_p1 = pnand %p525_p0, %p519_p10 }
  0x38   : > { %529 = shalt.err (!%p526_p1)
}
  0x39   : > { %s588_s4 = smov 128   ;;  %s589_s5 = smov 8  }
  0x3a   : > { %429 = dma.hbm_to_vmem [thread:$0]  (!%p665_p12), %s676_s6, 256, %s678_s3, %s686_s9, %s588_s4, %s588_s4, %s589_s5  }
  0x3b   : > { %s719_s7 = scalar_select %p682_p6, %s572_s11, %s58_s16  }
  0x3c   : > { %p813_p9 = scmp.ne.s32.totalorder %s810_s22, 0 }
  0x3d   : > { %p814_p3 = scmp.ne.s32.totalorder (!%p813_p9), %s808_s17, 0 }
  0x3e   : > { %159 = sbr.rel (%p813_p9) target bundleno = 104 (0x68), region = 28 }
  0x45   : > { %555 = dma.done.wait (%p814_p3), [#allocation4], 16  }
  0x46   : > { %557 = vsyncadd (%p814_p3), [#allocation4], 4294967280  ;;  %s165_s15 = sand.u32 1, %s568_s10   ;;  %p815_p12 = scmp.ne.s32.totalorder %s809_s18, 0 }
  0x47   : > { %s728_s19 = sshll.u32 %s165_s15, 4  ;;  %s166_s24 = scalar_lea.sflag [#allocation3], %s165_s15 }
  0x48   : > { %s169_s3 = scalar_lea.vmem [#allocation5], %s728_s19 }
  0x49   : > { %559 = dma.done.wait (%p815_p12), %s166_s24, 256  }
  0x4a   : > { %561 = vsyncadd (%p815_p12), %s166_s24, 4294967040 }
  0x4b   : > { %174 = sfence }
  0x4c   : > { %p197_p6 = scmp.lt.s32.totalorder %s576_s12, 1  ;;  %v208_v0 = vlaneseq  ;;  %s737_s16 = smul.u32 9, %s576_s12  ;;  %vm250_vm0 = vcmask 130048   ;;  %v590_v5 = vmov 1.0   ;;  %v206_v17 = vld [vmem:[%s169_s3] sm:$0xff]  ;;  %v207_v18 = vld [vmem:[%s169_s3 + $0x8] sm:$0xff] }
  0x4e   : > { %s824_s12 = smov (!%p197_p6, %s576_s12), 1  ;;  %v209_v1 = vand.u32 127, %v208_v0  ;;  %v212_v2 = vshrl.u32 %v208_v0, 7  ;;  %s221_s17 = sld [smem:[#allocation2 + %s737_s16]] }
  0x4f   : > { %s222_s22 = sadd.s32 1, %s737_s16  ;;  %s415_s18 = sshll.u32 %s824_s12, 6 }
  0x50   : > { %s223_s6 = sld [smem:[#allocation2 + %s222_s22]]  ;;  %v213_v3 = vadd.s32 8, %v212_v2  ;;  %s745_s20 = scalar_lea.vmem %s803_s2, %s415_s18  ;;  %v210_v4 = vcvt.s32.f32 %v209_v1  ;;  %v218_v6 = vcvt.s32.f32 %v212_v2 }
  0x51   : > { %s224_s21 = sadd.s32 2, %s737_s16  ;;  %s226_s26 = sadd.s32 3, %s737_s16  ;;  %410 = vst.msk [vmem:[%s745_s20 + $0x30] sm:$0xff] %vm250_vm0, %v590_v5  ;;  %411 = vst.msk [vmem:[%s745_s20 + $0x38] sm:$0xff] %vm250_vm0, %v590_v5 }
  0x52   : > { %s748_s25 = sld [smem:[#allocation2 + %s224_s21]]  ;;  %v219_v7 = vcvt.s32.f32 %v213_v3  ;;  %s228_s23 = sadd.s32 4, %s737_s16 }
  0x53   : > { %s227_s12 = sld [smem:[#allocation2 + %s226_s26]]  ;;  %s230_s29 = sadd.s32 5, %s737_s16 }
  0x54   : > { %s229_s28 = sld [smem:[#allocation2 + %s228_s23]]  ;;  %v238_v8 = vstv %s221_s17  ;;  %s232_s4 = sadd.s32 6, %s737_s16 }
  0x55   : > { %s757_s30 = sld [smem:[#allocation2 + %s230_s29]]  ;;  %v239_v9 = vmul.f32 %v238_v8, %v210_v4  ;;  %s234_s15 = sadd.s32 7, %s737_s16 }
  0x56   : > { %v240_v10 = vstv %s223_s6  ;;  %s233_s5 = sld [smem:[#allocation2 + %s232_s4]]  ;;  %s236_s22 = sadd.s32 8, %s737_s16 }
  0x57   : > { %v241_v11 = vmul.f32 %v240_v10, %v218_v6  ;;  %v242_v12 = vmul.f32 %v240_v10, %v219_v7  ;;  %s235_s24 = sld [smem:[#allocation2 + %s234_s15]] }
  0x58   : > { %v245_v13 = vstv %s748_s25  ;;  %s763_s18 = sld [smem:[#allocation2 + %s236_s22]] }
  0x59   : > { %v243_v14 = vadd.f32 %v241_v11, %v239_v9  ;;  %v244_v15 = vadd.f32 %v242_v12, %v239_v9  ;;  %v253_v16 = vstv %s227_s12 }
  0x5a   : > { %v254_v19 = vmul.f32 %v253_v16, %v210_v4  ;;  %v255_v20 = vstv %s229_s28 }
  0x5b   : > { %v246_v21 = vadd.f32 %v245_v13, %v243_v14  ;;  %v247_v22 = vadd.f32 %v245_v13, %v244_v15  ;;  %v256_v23 = vmul.f32 %v255_v20, %v218_v6  ;;  %v260_v24 = vstv %s757_s30 }
  0x5c   : > { %v257_v25 = vmul.f32 %v255_v20, %v219_v7  ;;  %v268_v26 = vstv %s233_s5 }
  0x5d   : > { %v248_v27 = vmul.f32 %v246_v21, %v206_v17  ;;  %v249_v28 = vmul.f32 %v247_v22, %v207_v18  ;;  %v258_v29 = vadd.f32 %v256_v23, %v254_v19  ;;  %v269_v30 = vmul.f32 %v268_v26, %v210_v4 }
  0x5e   : > { %v259_v31 = vadd.f32 %v257_v25, %v254_v19  ;;  %v270_v32 = vstv %s235_s24  ;;  %v275_v37 = vstv %s763_s18 }
  0x5f   : > { %251 = vst.msk [vmem:[%s745_s20] sm:$0xff] %vm250_vm0, %v248_v27  ;;  %252 = vst.msk [vmem:[%s745_s20 + $0x8] sm:$0xff] %vm250_vm0, %v249_v28  ;;  %v261_v33 = vadd.f32 %v260_v24, %v258_v29  ;;  %v271_v34 = vmul.f32 %v270_v32, %v218_v6  ;;  %v272_v35 = vmul.f32 %v270_v32, %v219_v7 }
  0x60   : > { %v262_v36 = vadd.f32 %v260_v24, %v259_v31 }
  0x61   : > { %v263_v38 = vmul.f32 %v261_v33, %v206_v17  ;;  %v273_v39 = vadd.f32 %v271_v34, %v269_v30  ;;  %v274_v40 = vadd.f32 %v272_v35, %v269_v30 }
  0x62   : > { %v264_v41 = vmul.f32 %v262_v36, %v207_v18 }
  0x63   : > { %406 = vst.msk [vmem:[%s745_s20 + $0x10] sm:$0xff] %vm250_vm0, %v263_v38  ;;  %v276_v42 = vadd.f32 %v275_v37, %v273_v39  ;;  %v277_v43 = vadd.f32 %v275_v37, %v274_v40 }
  0x64   : > { %407 = vst.msk [vmem:[%s745_s20 + $0x18] sm:$0xff] %vm250_vm0, %v264_v41 }
  0x65   : > { %v278_v44 = vmul.f32 %v276_v42, %v206_v17  ;;  %v279_v45 = vmul.f32 %v277_v43, %v207_v18 }
  0x67   : > { %408 = vst.msk [vmem:[%s745_s20 + $0x20] sm:$0xff] %vm250_vm0, %v278_v44  ;;  %409 = vst.msk [vmem:[%s745_s20 + $0x28] sm:$0xff] %vm250_vm0, %v279_v45 }
  0x68 PF: > { %s16_s14 = sadd.s32 1, %s584_s14   ;;  %s816_s9 = smov %s568_s10 }
  0x69   : > { %p13_p11 = scmp.ge.s32.totalorder %s16_s14, 4   ;;  %s817_s10 = smov %s572_s11 }
  0x6a   : > { %s818_s11 = smov %s719_s7  ;;  %s819_s12 = smov %s580_s13 }
  0x6b   : > { %s820_s13 = smov %s822_s27  ;;  %15 = sbr.rel (!%p13_p11) target bundleno = 5 (0x5), region = 76 }
  0x72   :  { %316 = vsyncpa [#allocation3], 1 }
  0x73   :  { %318 = vsyncpa [#allocation3 + $0x1], 1 }
  0x74   :  { %319 = vsyncpa [#allocation4], 1 }
  0x75   :  { %321 = vsyncpa [#allocation4 + $0x1], 1 }

</bundles_post_ra>
